<compile_context>
chip_gen: v5e
topology: v5e:2x2
jax: 0.10.0
libtpu: 0.0.40
codegen_flags: <defaults>
</compile_context>

<pallas_src>
import functools
import math

import jax
import jax.numpy as jnp
from jax import lax
from jax.experimental import pallas as pl
from jax.experimental.pallas import tpu as pltpu


def sdpa_kernel(q_ref, k_ref, v_ref, out_ref, attn_ref, acc_ref, *, scale):
    ki = pl.program_id(1)

    q = q_ref[...]                      # (bb, Lq, d_k)  native dtype
    k = k_ref[...]                      # (bb, tk, d_k)  native dtype
    v = v_ref[...]                      # (bb, tk, d_v)  native dtype

    # Scores on the MXU: native-dtype operands, f32 accumulation, then 1/sqrt(d_k).
    s = jnp.einsum(
        "bqd,bkd->bqk", q, k, preferred_element_type=jnp.float32
    ) * jnp.float32(scale)                                   # (bb, Lq, tk) f32

    # torch.softmax(attn, dim=1) normalizes over the *query* axis (axis 1 here).
    # Each Lk column is independent, so softmax within an Lk tile is exact.
    m = jnp.max(s, axis=1, keepdims=True)                    # (bb, 1, tk)
    e = jnp.exp(s - m)                                       # (bb, Lq, tk)
    denom = jnp.sum(e, axis=1, keepdims=True)                # (bb, 1, tk)
    # Exact reciprocal (approx=True perturbed the returned probabilities and
    # the output enough to fail tolerance).
    attn = e * pl.reciprocal(denom)                          # (bb, Lq, tk)

    attn_ref[...] = attn.astype(attn_ref.dtype)

    @pl.when(ki == 0)
    def _():
        acc_ref[...] = jnp.zeros_like(acc_ref)

    # Second MXU matmul: attn (cast to v's dtype) @ v, f32 accumulate.
    acc_ref[...] += jnp.einsum(
        "bqk,bkv->bqv", attn.astype(v.dtype), v, preferred_element_type=jnp.float32
    )

    @pl.when(ki == pl.num_programs(1) - 1)
    def _():
        out_ref[...] = acc_ref[...].astype(out_ref.dtype)


def _pick_k_tile(Lk, max_tile=512):
    """Whole axis if it fits; otherwise the largest multiple of 128 (<= max_tile)
    that divides Lk (keeps blocks lane-legal); fall back to the whole axis."""
    if Lk <= max_tile:
        return Lk
    t = (max_tile // 128) * 128
    while t >= 128:
        if Lk % t == 0:
            return t
        t -= 128
    return Lk


def _pick_batch_block(B, Lq, Lk, d_k, d_v):
    """Batch several tiny problems per grid step (wider MXU operands, fewer
    per-step overheads) while keeping >= 2 steps on the parallel axis so both
    v7x TensorCores stay busy."""
    per_batch = Lq * Lk * (d_k + d_v)       # rough work proxy per batch element
    target = 256 * 256 * 256
    bb = 1
    while (B % (bb * 2) == 0
           and B // (bb * 2) >= 2
           and bb * per_batch < target):
        bb *= 2
    return bb


def scaled_dot_product_attention(q, k, v, attn_mask=None, *, block_k=None, block_b=None):
    """q: (B, Lq, d_k), k: (B, Lk, d_k), v: (B, Lk, d_v) -> (outputs, attn).

    attn_mask / dropout are accepted-but-unused, matching the reference forward.
    """
    del attn_mask  # TODO(synk): reference forward never applies attn_mask or dropout.
    B, Lq, d_k = q.shape
    _, Lk, _ = k.shape
    d_v = v.shape[-1]
    scale = 1.0 / math.sqrt(float(d_k))

    tk = block_k if block_k is not None else _pick_k_tile(Lk)
    bb = block_b if block_b is not None else _pick_batch_block(B, Lq, Lk, d_k, d_v)
    assert Lk % tk == 0, f"Lk={Lk} not divisible by block_k={tk}"
    assert B % bb == 0, f"B={B} not divisible by block_b={bb}"

    grid = (B // bb, Lk // tk)
    kernel = functools.partial(sdpa_kernel, scale=scale)

    itemsize = jnp.dtype(q.dtype).itemsize
    cost = pl.CostEstimate(
        flops=2 * B * Lq * Lk * (d_k + d_v),
        transcendentals=B * Lq * Lk,
        bytes_accessed=(q.size + k.size + v.size) * itemsize
        + (B * Lq * d_v + B * Lq * Lk) * itemsize,
    )

    outputs, attn = pl.pallas_call(
        kernel,
        out_shape=(
            jax.ShapeDtypeStruct((B, Lq, d_v), q.dtype),
            jax.ShapeDtypeStruct((B, Lq, Lk), q.dtype),
        ),
        grid_spec=pltpu.PrefetchScalarGridSpec(
            num_scalar_prefetch=0,
            grid=grid,
            in_specs=[
                pl.BlockSpec((bb, Lq, d_k), lambda b, ki: (b, 0, 0)),   # q (reused over ki)
                pl.BlockSpec((bb, tk, d_k), lambda b, ki: (b, ki, 0)),  # k tile
                pl.BlockSpec((bb, tk, d_v), lambda b, ki: (b, ki, 0)),  # v tile
            ],
            out_specs=[
                pl.BlockSpec((bb, Lq, d_v), lambda b, ki: (b, 0, 0)),   # out (accumulated)
                pl.BlockSpec((bb, Lq, tk), lambda b, ki: (b, 0, ki)),   # attn tile
            ],
            scratch_shapes=[pltpu.VMEM((bb, Lq, d_v), jnp.float32)],
        ),
        compiler_params=pltpu.CompilerParams(
            dimension_semantics=("parallel", "arbitrary"),
        ),
        cost_estimate=cost,
    )(q, k, v)
    return outputs, attn


if __name__ == "__main__":
    batch, len_q, len_k, d_k, d_v = 2, 8, 8, 32, 32

    key = jax.random.PRNGKey(0)
    kq, kk, kv = jax.random.split(key, 3)
    q = jax.random.normal(kq, (batch, len_q, d_k), dtype=jnp.float32)
    k = jax.random.normal(kk, (batch, len_k, d_k), dtype=jnp.float32)
    v = jax.random.normal(kv, (batch, len_k, d_v), dtype=jnp.float32)

    outputs, attn = scaled_dot_product_attention(q, k, v)
    outputs = jax.block_until_ready(outputs)
    attn = jax.block_until_ready(attn)

    # Pure-JAX reference with identical semantics to the torch forward
    # (softmax over dim=1, i.e. the query axis). Highest precision so the
    # reference itself is not the error source on real TPUs.
    s_ref = jnp.einsum(
        "bqd,bkd->bqk", q, k, precision=lax.Precision.HIGHEST
    ) / jnp.float32(math.sqrt(d_k))
    attn_ref = jax.nn.softmax(s_ref, axis=1)
    out_ref = jnp.einsum(
        "bqk,bkv->bqv", attn_ref, v, precision=lax.Precision.HIGHEST
    )

    assert jnp.allclose(attn, attn_ref, atol=2e-3, rtol=2e-3), "attn mismatch"
    assert jnp.allclose(outputs, out_ref, atol=2e-3, rtol=2e-3), "output mismatch"

    print("KERNEL_OK")
</pallas_src>

<mosaic_0001>
module attributes {stable_mosaic.version = 11 : i64} {
  func.func @sdpa_kernel(%arg0: i32, %arg1: i32, %arg2: memref<1x8x32xf32, #tpu.memory_space<vmem>>, %arg3: memref<1x8x32xf32, #tpu.memory_space<vmem>>, %arg4: memref<1x8x32xf32, #tpu.memory_space<vmem>>, %arg5: memref<1x8x32xf32, #tpu.memory_space<vmem>>, %arg6: memref<1x8x8xf32, #tpu.memory_space<vmem>>, %arg7: memref<1x8x32xf32, #tpu.memory_space<vmem>>) attributes {dimension_semantics = [#tpu.dimension_semantics<parallel>, #tpu.dimension_semantics<arbitrary>], iteration_bounds = array<i64: 2, 1>, scalar_prefetch = 0 : i64, scratch_operands = 1 : i64, tpu.core_type = #tpu.core_type<tc>, window_params = [{transform_indices = @transform_0, window_bounds = array<i64: 1, 8, 32>}, {transform_indices = @transform_1, window_bounds = array<i64: 1, 8, 32>}, {transform_indices = @transform_2, window_bounds = array<i64: 1, 8, 32>}, {transform_indices = @transform_3, window_bounds = array<i64: 1, 8, 32>}, {transform_indices = @transform_4, window_bounds = array<i64: 1, 8, 8>}]} {
    %c0 = arith.constant 0 : index
    %c0_0 = arith.constant 0 : index
    %c0_1 = arith.constant 0 : index
    %0 = vector.load %arg2[%c0, %c0_0, %c0_1] : memref<1x8x32xf32, #tpu.memory_space<vmem>>, vector<1x8x32xf32>
    %c0_2 = arith.constant 0 : index
    %c0_3 = arith.constant 0 : index
    %c0_4 = arith.constant 0 : index
    %1 = vector.load %arg3[%c0_2, %c0_3, %c0_4] : memref<1x8x32xf32, #tpu.memory_space<vmem>>, vector<1x8x32xf32>
    %c0_5 = arith.constant 0 : index
    %c0_6 = arith.constant 0 : index
    %c0_7 = arith.constant 0 : index
    %2 = vector.load %arg4[%c0_5, %c0_6, %c0_7] : memref<1x8x32xf32, #tpu.memory_space<vmem>>, vector<1x8x32xf32>
    "tpu.trace_start"() <{level = 10 : i32, message = "bqd,bkd->bqk"}> : () -> ()
    %cst = arith.constant dense<0.000000e+00> : vector<1x8x8xf32>
    %3 = tpu.matmul %0, %1, %cst {dimension_numbers = #tpu.dot_dimension_numbers<[2], [2], [1], [1], [0, 0, 0, 1, 1, 1], [0], [0]>} : vector<1x8x32xf32>, vector<1x8x32xf32>, vector<1x8x8xf32> -> vector<1x8x8xf32>
    "tpu.trace_stop"() : () -> ()
    %cst_8 = arith.constant 0.176776692 : f32
    %4 = vector.broadcast %cst_8 : f32 to vector<1x8x8xf32>
    %5 = arith.mulf %3, %4 : vector<1x8x8xf32>
    %cst_9 = arith.constant dense<0xFF800000> : vector<1x8xf32>
    %6 = vector.multi_reduction <maximumf>, %5, %cst_9 [1] : vector<1x8x8xf32> to vector<1x8xf32>
    %7 = vector.shape_cast %6 : vector<1x8xf32> to vector<1x1x8xf32>
    %8 = vector.broadcast %7 : vector<1x1x8xf32> to vector<1x8x8xf32>
    %9 = arith.subf %5, %8 : vector<1x8x8xf32>
    %10 = math.exp %9 : vector<1x8x8xf32>
    %cst_10 = arith.constant dense<0.000000e+00> : vector<1x8xf32>
    %11 = vector.multi_reduction <add>, %10, %cst_10 [1] : vector<1x8x8xf32> to vector<1x8xf32>
    %12 = vector.shape_cast %11 : vector<1x8xf32> to vector<1x1x8xf32>
    %13 = tpu.reciprocal %12 : vector<1x1x8xf32> -> vector<1x1x8xf32>
    %14 = vector.broadcast %13 : vector<1x1x8xf32> to vector<1x8x8xf32>
    %15 = arith.mulf %10, %14 : vector<1x8x8xf32>
    %c0_11 = arith.constant 0 : index
    %c0_12 = arith.constant 0 : index
    %c0_13 = arith.constant 0 : index
    %16 = vector.load %arg6[%c0_11, %c0_12, %c0_13] : memref<1x8x8xf32, #tpu.memory_space<vmem>>, vector<1x8x8xf32>
    tpu.vector_store %arg6[%c0_11, %c0_12, %c0_13], %15 {strides = array<i32>} : memref<1x8x8xf32, #tpu.memory_space<vmem>>, vector<1x8x8xf32>,
    %c0_i32 = arith.constant 0 : i32
    %17 = arith.cmpi eq, %arg1, %c0_i32 : i32
    %18 = arith.extui %17 : i1 to i32
    %c0_i32_14 = arith.constant 0 : i32
    %19 = arith.cmpi ne, %18, %c0_i32_14 : i32
    scf.if %19 {
      %cst_24 = arith.constant 0.000000e+00 : f32
      %27 = vector.broadcast %cst_24 : f32 to vector<1x8x32xf32>
      %c0_25 = arith.constant 0 : index
      %c0_26 = arith.constant 0 : index
      %c0_27 = arith.constant 0 : index
      %28 = vector.load %arg7[%c0_25, %c0_26, %c0_27] : memref<1x8x32xf32, #tpu.memory_space<vmem>>, vector<1x8x32xf32>
      tpu.vector_store %arg7[%c0_25, %c0_26, %c0_27], %27 {strides = array<i32>} : memref<1x8x32xf32, #tpu.memory_space<vmem>>, vector<1x8x32xf32>,
    } else {
    }
    %c0_15 = arith.constant 0 : index
    %c0_16 = arith.constant 0 : index
    %c0_17 = arith.constant 0 : index
    %20 = vector.load %arg7[%c0_15, %c0_16, %c0_17] : memref<1x8x32xf32, #tpu.memory_space<vmem>>, vector<1x8x32xf32>
    "tpu.trace_start"() <{level = 10 : i32, message = "bqk,bkv->bqv"}> : () -> ()
    %cst_18 = arith.constant dense<0.000000e+00> : vector<1x8x32xf32>
    %21 = tpu.matmul %15, %2, %cst_18 {dimension_numbers = #tpu.dot_dimension_numbers<[2], [1], [1], [2], [0, 0, 0, 1, 1, 2], [0], [0]>} : vector<1x8x8xf32>, vector<1x8x32xf32>, vector<1x8x32xf32> -> vector<1x8x32xf32>
    "tpu.trace_stop"() : () -> ()
    %22 = arith.addf %20, %21 : vector<1x8x32xf32>
    %c0_19 = arith.constant 0 : index
    %c0_20 = arith.constant 0 : index
    %c0_21 = arith.constant 0 : index
    %23 = vector.load %arg7[%c0_19, %c0_20, %c0_21] : memref<1x8x32xf32, #tpu.memory_space<vmem>>, vector<1x8x32xf32>
    tpu.vector_store %arg7[%c0_19, %c0_20, %c0_21], %22 {strides = array<i32>} : memref<1x8x32xf32, #tpu.memory_space<vmem>>, vector<1x8x32xf32>,
    %c0_i32_22 = arith.constant 0 : i32
    %24 = arith.cmpi eq, %arg1, %c0_i32_22 : i32
    %25 = arith.extui %24 : i1 to i32
    %c0_i32_23 = arith.constant 0 : i32
    %26 = arith.cmpi ne, %25, %c0_i32_23 : i32
    scf.if %26 {
      %c0_24 = arith.constant 0 : index
      %c0_25 = arith.constant 0 : index
      %c0_26 = arith.constant 0 : index
      %27 = vector.load %arg7[%c0_24, %c0_25, %c0_26] : memref<1x8x32xf32, #tpu.memory_space<vmem>>, vector<1x8x32xf32>
      %c0_27 = arith.constant 0 : index
      %c0_28 = arith.constant 0 : index
      %c0_29 = arith.constant 0 : index
      %28 = vector.load %arg5[%c0_27, %c0_28, %c0_29] : memref<1x8x32xf32, #tpu.memory_space<vmem>>, vector<1x8x32xf32>
      tpu.vector_store %arg5[%c0_27, %c0_28, %c0_29], %27 {strides = array<i32>} : memref<1x8x32xf32, #tpu.memory_space<vmem>>, vector<1x8x32xf32>,
    } else {
    }
    return
  }
  func.func @transform_0(%arg0: i32, %arg1: i32) -> (i32, i32, i32) {
    %c0_i32 = arith.constant 0 : i32
    %c0_i32_0 = arith.constant 0 : i32
    %c0_i32_1 = arith.constant 0 : i32
    return %arg0, %c0_i32, %c0_i32_0 : i32, i32, i32
  }
  func.func @transform_1(%arg0: i32, %arg1: i32) -> (i32, i32, i32) {
    %c0_i32 = arith.constant 0 : i32
    %c0_i32_0 = arith.constant 0 : i32
    return %arg0, %arg1, %c0_i32 : i32, i32, i32
  }
  func.func @transform_2(%arg0: i32, %arg1: i32) -> (i32, i32, i32) {
    %c0_i32 = arith.constant 0 : i32
    %c0_i32_0 = arith.constant 0 : i32
    return %arg0, %arg1, %c0_i32 : i32, i32, i32
  }
  func.func @transform_3(%arg0: i32, %arg1: i32) -> (i32, i32, i32) {
    %c0_i32 = arith.constant 0 : i32
    %c0_i32_0 = arith.constant 0 : i32
    %c0_i32_1 = arith.constant 0 : i32
    return %arg0, %c0_i32, %c0_i32_0 : i32, i32, i32
  }
  func.func @transform_4(%arg0: i32, %arg1: i32) -> (i32, i32, i32) {
    %c0_i32 = arith.constant 0 : i32
    %c0_i32_0 = arith.constant 0 : i32
    return %arg0, %c0_i32, %arg1 : i32, i32, i32
  }
}

</mosaic_0001>

<bundles_post_ra>
// kernel: tpu_custom_call.1
= control target key start
LH: loop header
LB: loop body
LE: loop exit
PB: predicated region body
PF: predicated region fallthrough
CT: control target
= control target key end

     0   :  { %s1140_s0 = inlined_call_operand.hbm [shape: f32[2,8,32], index: 0, kind: input, shape index: {}]   ;;  %s1141_s1 = inlined_call_operand.hbm [shape: f32[2,8,32], index: 1, kind: input, shape index: {}]   ;;  %s1142_s2 = inlined_call_operand.hbm [shape: f32[2,8,32], index: 2, kind: input, shape index: {}]   ;;  %s1143_s3 = inlined_call_operand.hbm [shape: f32[2,8,32], index: 3, kind: output, shape index: {0}]   ;;  %s1144_s4 = inlined_call_operand.hbm [shape: f32[2,8,8], index: 4, kind: output, shape index: {1}]  }
   0x1   :  { %1148 = sst [smem:[#allocation20_spill]] %s1141_s1 }
   0x2   :  { %10 = vsyncpa [#allocation4], 0 }
   0x3   :  { %12 = vsyncpa [#allocation4 + $0x1], 0 }
   0x4   :  { %13 = vsyncpa [#allocation7], 0 }
   0x5   :  { %15 = vsyncpa [#allocation7 + $0x1], 0 }
   0x6   :  { %16 = vsyncpa [#allocation5], 0 }
   0x7   :  { %18 = vsyncpa [#allocation5 + $0x1], 0 }
   0x8   :  { %19 = vsyncpa [#allocation11], 0 }
   0x9   :  { %21 = vsyncpa [#allocation11 + $0x1], 0  ;;  %s958_s15 = smov 0   ;;  %s960_s16 = smov 0  }
   0xa   :  { %s962_s17 = smov 0   ;;  %s964_s18 = smov 0  }
   0xb   :  { %s966_s19 = smov 0   ;;  %s968_s20 = smov 0  }
   0xc LB: > { %1149 = sst [smem:[#allocation16_spill]] %s918_s17  ;;  %s989_s21 = sadd.s32 4294967295, %s930_s20   ;;  %s930_s20 = sphi %s968_s20, %s27_s20   ;;  %s926_s19 = sphi %s966_s19, %s1163_s19   ;;  %s922_s18 = sphi %s964_s18, %s1162_s18   ;;  %s918_s17 = sphi %s962_s17, %s1161_s17   ;;  %s914_s16 = sphi %s960_s16, %s1165_s16   ;;  %s910_s15 = sphi %s958_s15, %s1164_s15  }
   0xd   : > { %1150 = sst [smem:[#allocation17_spill]] %s926_s19  ;;  %s616_s22 = sadd.s32 4294967294, %s930_s20  }
   0xe   : > { %s39_s23 = sadd.s32 1, %s926_s19  ;;  %s46_s24 = sadd.s32 1, %s918_s17 }
   0xf   : > { %p41_p0 = scmp.ge.s32.totalorder %s39_s23, 2  ;;  %p53_p1 = scmp.ne.s32.totalorder %s918_s17, %s914_s16 }
  0x10   : > { %p54_p2 = scmp.eq.s32.totalorder %s930_s20, 0  ;;  %p59_p3 = scmp.ne.s32.totalorder %s914_s16, %s910_s15 }
  0x11   : > { %s1167_s23 = smov (%p41_p0, %s39_s23), 0  ;;  %p60_p5 = scmp.eq.s32.totalorder %s989_s21, 0 }
  0x12   : > { %1151 = sst [smem:[#allocation18_spill]] %s1167_s23  ;;  %p1001_p4 = por %p54_p2, %p53_p1 }
  0x13   : > { %s43_s26 = ssub.s32 %s926_s19, %s1167_s23  ;;  %p139_p6 = scmp.eq.s32.totalorder %s989_s21, 1 }
  0x14   : > { %p44_p7 = scmp.eq.s32.totalorder %s43_s26, 0  ;;  %p1009_p8 = por %p60_p5, %p59_p3 }
  0x15   : > { %p1013_p9 = por %p139_p6, %p53_p1  ;;  %p145_p10 = scmp.eq.s32.totalorder %s616_s22, 1 }
  0x16   : > { %s1018_s29 = scalar_select %p44_p7, %s918_s17, %s46_s24  }
  0x17   : > { %p1020_p11 = por %p145_p10, %p59_p3  ;;  %p618_p12 = scmp.ge.s32.totalorder %s930_s20, 2 }
  0x18   : > { %1155 = sst [smem:[#allocation19_spill]] %s1018_s29  ;;  %p667_p13 = scmp.lt.s32.totalorder %s930_s20, 2 }
  0x19   : > { %s193_s5 = sand.u32 1, %s918_s17   ;;  %s620_s7 = sshll.u32 %s926_s19, 3 }
  0x1a   : > { %s619_s6 = sshll.u32 %s193_s5, 3  ;;  %p1030_p0 = pnand %p667_p13, %p1001_p4 }
  0x1b   : > { %s212_s9 = sand.u32 1, %s930_s20   ;;  %s1158_s1 = sld [smem:[#allocation20_spill]] }
  0x1c   : > { %s216_s14 = scalar_lea.vmem [#allocation6], %s619_s6  ;;  %s213_s24 = scalar_lea.sflag [#allocation7], %s212_s9 }
  0x1d   : > { %s225_s22 = sshll.u32 %s216_s14, 4  ;;  %p625_p1 = scmp.ge.s32.totalorder %s930_s20, 1  ;;  %s226_s22 = int_to_ptr.vmem [resolvable:$true] %s225_s22 }
  0x1e   : > { %p250_p2 = scmp.lt.s32.totalorder %s930_s20, 3  ;;  %s201_s10 = scalar_lea.hbm %s1140_s0, %s620_s7 }
  0x1f   : > { %s203_s11 = sshll.u32 %s201_s10, 4  ;;  %s194_s14 = scalar_lea.sflag [#allocation4], %s193_s5  ;;  %s204_s11 = int_to_ptr.hbm [resolvable:$true] %s203_s11 }
  0x20   : > { %p1042_p3 = pnand %p625_p1, %p250_p2  ;;  %s236_s29 = scalar_lea.vmem [#allocation8], %s619_s6 }
  0x21   : > { %s221_s12 = scalar_lea.hbm %s1158_s1, %s620_s7  ;;  %s245_s17 = sshll.u32 %s236_s29, 4  ;;  %s246_s17 = int_to_ptr.vmem [resolvable:$true] %s245_s17 }
  0x22   : > { %s223_s13 = sshll.u32 %s221_s12, 4  ;;  %s197_s12 = scalar_lea.vmem [#allocation3], %s619_s6  ;;  %s224_s13 = int_to_ptr.hbm [resolvable:$true] %s223_s13 }
  0x23   : > { %656 = dma.hbm_to_vmem [thread:$0]  (!%p1030_p0), %s224_s13, 128, %s226_s22, %s213_s24  }
  0x24   : > { %s205_s1 = sshll.u32 %s197_s12, 4  ;;  %s241_s22 = scalar_lea.hbm %s1142_s2, %s620_s7  ;;  %s206_s1 = int_to_ptr.vmem [resolvable:$true] %s205_s1 }
  0x25   : > { %653 = dma.hbm_to_vmem [thread:$0]  (!%p1030_p0), %s204_s11, 128, %s206_s1, %s194_s14  }
  0x26   : > { %s243_s19 = sshll.u32 %s241_s22, 4  ;;  %254 = sbr.rel (%p1042_p3) target bundleno = 374 (0x176), region = 32  ;;  %s244_s19 = int_to_ptr.hbm [resolvable:$true] %s243_s19 }
  0x27   : > { %659 = dma.hbm_to_vmem [thread:$0]  (!%p1030_p0), %s244_s19, 128, %s246_s17, %s213_s24  }
  0x28   : > { %s1059_s23 = sand.u32 (!%p1042_p3), 1, %s914_s16  }
  0x29   : > { %s1062_s1 = sshll.u32 (!%p1042_p3), %s1059_s23, 3  ;;  %s257_s5 = scalar_lea.sflag (!%p1042_p3), [#allocation4], %s1059_s23 }
  0x2a   : > { %s260_s7 = scalar_lea.vmem (!%p1042_p3), [#allocation3], %s1062_s1 }
  0x2b   : > { %893 = dma.done.wait (%p1009_p8), %s257_s5, 128  }
  0x2c   : > { %895 = vsyncadd (%p1009_p8), %s257_s5, 4294967168  ;;  %s266_s17 = sand.u32 1, %s989_s21   ;;  %s270_s29 = scalar_lea.vmem [#allocation6], %s1062_s1 }
  0x2d   : > { %s267_s19 = scalar_lea.sflag [#allocation7], %s266_s17 }
  0x2e   : > { %897 = dma.done.wait (%p1009_p8), %s267_s19, 256  }
  0x2f   : > { %899 = vsyncadd (%p1009_p8), %s267_s19, 4294967040  ;;  %vm324_vm0 = vcmask 261120   ;;  %v932_v0 = vmov 0.0   ;;  %v322_v1 = vld [vmem:[%s270_s29] sm:$0xff]  ;;  %v321_v2 = vld [vmem:[%s260_s7] sm:$0xff]  ;;  %vm352_vm1 = vcmask 64512  }
  0x30   : > { %390 = vst.msk [vmem:[#allocation2] sm:$0xff] %vm324_vm0, %v932_v0  ;;  %631 = vmatpush.xpose.msk.msra.mxu0 %vm324_vm0, %v322_v1  ;;  %s280_s21 = scalar_lea.vmem [#allocation8], %s1062_s1  ;;  %s320_s27 = scalar_lea.vmem [#allocation10], %s1062_s1 }
  0x31   : > { %v323_v9 = vld [vmem:[%s280_s21] sm:$0xff]  ;;  %s636_s6 = sshll.u32 %s922_s18, 3  ;;  %s455_s26 = sshll.u32 %s320_s27, 4  ;;  %s456_s26 = int_to_ptr.vmem [resolvable:$true] %s455_s26 }
  0x32   : > { %410 = vmatpush.msra.mxu1 %v323_v9  ;;  %s453_s25 = scalar_lea.hbm %s1144_s4, %s636_s6  ;;  %s428_s11 = scalar_lea.sflag [#allocation11], %s1059_s23 }
  0x33   : > { %632 = vmatmul.msk.f32.vlgmr.msra.gmra.mxu0 %vm324_vm0, %v321_v2  ;;  %s457_s10 = sshll.u32 %s453_s25, 4  ;;  %s832_s18 = scalar_lea.hbm %s1144_s4, 16  ;;  %s458_s10 = int_to_ptr.hbm [resolvable:$true] %s457_s10 }
  0x34   : > { %s826_s12 = sshra.s32 %s458_s10, 4  ;;  %s827_s12 = int_to_ptr.hbm [resolvable:$true] %s826_s12 }
  0x35   : > { %s828_s14 = scalar_lea.hbm %s827_s12, 8  ;;  %p833_p7 = scmp.lt.s32.totalorder %s827_s12, %s1144_s4 }
  0x36   : > { %p829_p4 = scmp.ne.s32.totalorder %s827_s12, %s828_s14  ;;  %p834_p8 = scmp.lt.s32.totalorder %s832_s18, %s828_s14 }
  0x38   : > { %p830_p5 = pnand %p829_p4, %p1013_p9  ;;  %p835_p10 = por %p834_p8, %p833_p7 }
  0x3a   : > { %p831_p6 = pneg %p830_p5 }
  0x3c   : > { %p836_p13 = pnand %p835_p10, %p831_p6 }
  0xb0   : > { %v348_v3 = vpop.f32.mrf.mxu0 }
  0xb1   : > { %v351_v4 = vmul.f32 0.17677669, %v348_v3 }
  0xb3   : > { %v353_v5 = vsel %vm352_vm1, %v351_v4, -inf }
  0xb4   : > { %v354_v6 = vrot.slane %v353_v5, 4 }
  0xb6   : > { %v355_v7 = vmax.f32 %v353_v5, %v354_v6 }
  0xb8   : > { %v356_v8 = vrot.slane %v355_v7, 2 }
  0xba   : > { %v357_v10 = vmax.f32 %v355_v7, %v356_v8 }
  0xbc   : > { %v358_v11 = vrot.slane %v357_v10, 1 }
  0xbe   : > { %v359_v12 = vmax.f32 %v357_v10, %v358_v11 }
  0xc0   : > { %v360_v13 = vsub.f32 %v351_v4, %v359_v12 }
  0xc2   : > { %v361_v14 = vmul.f32 1.442695, %v360_v13 }
  0xc4   : > { %718 = vpow2.f32 %v361_v14 }
  0xca   : > { %v719_v15 = vpop.eup %718 }
  0xcb   : > { %v363_v16 = vsel %vm352_vm1, %v719_v15, 0.0 }
  0xcc   : > { %v364_v17 = vrot.slane %v363_v16, 4 }
  0xce   : > { %v365_v18 = vadd.f32 %v364_v17, %v363_v16 }
  0xd0   : > { %v366_v19 = vrot.slane %v365_v18, 2 }
  0xd2   : > { %v367_v20 = vadd.f32 %v366_v19, %v365_v18 }
  0xd4   : > { %v368_v21 = vrot.slane %v367_v20, 1 }
  0xd6   : > { %v369_v22 = vadd.f32 %v368_v21, %v367_v20 }
  0xd8   : > { %720 = vrcp.f32 %v369_v22  ;;  %v381_v26 = vand.u32 2147483648, %v369_v22  ;;  %v379_v28 = vand.u32 2147483647, %v369_v22  ;;  %vm375_vm3 = vweird.f32 %v369_v22 }
  0xda   : > { %v382_v30 = vor.u32 1.1754944e-38, %v381_v26  ;;  %vm380_vm5 = vcmp.eq.f32.partialorder %v379_v28, 8.507059e+37 }
  0xde   : > { %v721_v23 = vpop.eup %720 }
  0xdf   : > { %v371_v24 = vmul.f32 %v721_v23, %v369_v22  ;;  %vm376_vm2 = vweird.f32 %v721_v23 }
  0xe0   : > { %vm377_vm4 = vmor %vm375_vm3, %vm376_vm2 }
  0xe1   : > { %v372_v25 = vsub.f32 1.0, %v371_v24 }
  0xe3   : > { %v373_v27 = vmul.f32 %v721_v23, %v372_v25 }
  0xe5   : > { %v374_v29 = vadd.f32 %v721_v23, %v373_v27 }
  0xe7   : > { %v378_v31 = vsel %vm377_vm4, %v721_v23, %v374_v29 }
  0xe8   : > { %v383_v32 = vsel %vm380_vm5, %v382_v30, %v378_v31 }
  0xe9   : > { %v384_v33 = vmul.f32 %v719_v15, %v383_v32 }
  0xeb   : > { %633 = vmatmul.msk.f32.vlgmr.msra.gmra.mxu1 %vm352_vm1, %v384_v33  ;;  %385 = vst.msk [vmem:[%s320_s27] sm:$0xff] %vm352_vm1, %v384_v33 }
  0xec   : > { %839 = shalt.err (!%p836_p13)
}
  0xed   : > { %647 = dma.vmem_to_hbm [thread:$0]  (%p1013_p9), %s456_s26, 128, %s458_s10, %s428_s11   ;;  %v391_v34 = vld [vmem:[#allocation2] sm:$0xff] }
  0xee   : > { %s438_s19 = scalar_lea.hbm %s1143_s3, %s636_s6  ;;  %s313_s29 = scalar_lea.vmem [#allocation9], %s1062_s1 }
  0xef   : > { %s440_s21 = sshll.u32 %s313_s29, 4  ;;  %s442_s27 = sshll.u32 %s438_s19, 4  ;;  %s441_s21 = int_to_ptr.vmem [resolvable:$true] %s440_s21  ;;  %s443_s27 = int_to_ptr.hbm [resolvable:$true] %s442_s27 }
  0xf0   : > { %s423_s8 = scalar_lea.sflag [#allocation5], %s1059_s23  ;;  %s854_s24 = sshra.s32 %s443_s27, 4  ;;  %s855_s24 = int_to_ptr.hbm [resolvable:$true] %s854_s24 }
  0xf1   : > { %s856_s25 = scalar_lea.hbm %s855_s24, 8  ;;  %s860_s6 = scalar_lea.hbm %s1143_s3, 16 }
  0xf2   : > { %p857_p0 = scmp.ne.s32.totalorder %s855_s24, %s856_s25  ;;  %p861_p3 = scmp.lt.s32.totalorder %s855_s24, %s1143_s3 }
  0xf3   : > { %p862_p4 = scmp.lt.s32.totalorder %s860_s6, %s856_s25 }
  0xf4   : > { %p858_p1 = pnand %p857_p0, %p1013_p9 }
  0xf5   : > { %p863_p5 = por %p862_p4, %p861_p3 }
  0xf6   : > { %p859_p2 = pneg %p858_p1 }
  0xf8   : > { %p864_p6 = pnand %p863_p5, %p859_p2 }
 0x168   : > { %v412_v35 = vpop.f32.mrf.mxu1 }
 0x169   : > { %v415_v36 = vadd.f32 %v412_v35, %v391_v34 }
 0x16b   : > { %416 = vst.msk [vmem:[#allocation2] sm:$0xff] %vm324_vm0, %v415_v36 }
 0x172   : > { %v420_v37 = vld [vmem:[#allocation2] sm:$0xff] }
 0x173   : > { %421 = vst.msk [vmem:[%s313_s29] sm:$0xff] %vm324_vm0, %v420_v37 }
 0x174   : > { %867 = shalt.err (!%p864_p6)
}
 0x175   : > { %646 = dma.vmem_to_hbm [thread:$0]  (%p1013_p9), %s441_s21, 128, %s443_s27, %s423_s8  }
 0x176 PF: > { %s469_s23 = sand.u32 1, %s910_s15   ;;  %p661_p7 = pnand %p618_p12, %p1020_p11 }
 0x177   : > { %s470_s12 = scalar_lea.sflag [#allocation5], %s469_s23 }
 0x178   : > { %p662_p8 = pneg %p661_p7 }
 0x17a   : > { %901 = dma.done.wait (%p662_p8), %s470_s12, 128  }
 0x17b   : > { %903 = vsyncadd (%p662_p8), %s470_s12, 4294967168  ;;  %s480_s14 = scalar_lea.sflag [#allocation11], %s469_s23 }
 0x17c   : > { %905 = dma.done.wait (%p662_p8), %s480_s14, 128  }
 0x17d   : > { %907 = vsyncadd (%p662_p8), %s480_s14, 4294967168  ;;  %s27_s20 = sadd.s32 1, %s930_s20   ;;  %s1160_s28 = sld [smem:[#allocation16_spill]] }
 0x17e   : > { %p24_p10 = scmp.ge.s32.totalorder %s27_s20, 4   ;;  %s1161_s17 = sld [smem:[#allocation19_spill]] }
 0x17f   : > { %s1162_s18 = sld [smem:[#allocation17_spill]]  ;;  %s1164_s15 = smov %s914_s16 }
 0x180   : > { %s1163_s19 = sld [smem:[#allocation18_spill]]  ;;  %26 = sbr.rel (!%p24_p10) target bundleno = 12 (0xc), region = 126 }
 0x183   : > { %s1165_s16 = smov %s1160_s28 }
 0x185   :  { %486 = vsyncpa [#allocation4], 1 }
 0x186   :  { %488 = vsyncpa [#allocation4 + $0x1], 1 }
 0x187   :  { %489 = vsyncpa [#allocation7], 1 }
 0x188   :  { %491 = vsyncpa [#allocation7 + $0x1], 1 }
 0x189   :  { %492 = vsyncpa [#allocation5], 1 }
 0x18a   :  { %494 = vsyncpa [#allocation5 + $0x1], 1 }
 0x18b   :  { %495 = vsyncpa [#allocation11], 1 }
 0x18c   :  { %497 = vsyncpa [#allocation11 + $0x1], 1 }

</bundles_post_ra>
